<compile_context>
chip_gen: v5e
topology: v5e:2x2
jax: 0.10.0
libtpu: 0.0.40
codegen_flags: <defaults>
</compile_context>

<pallas_src>
import functools
import math

import jax
import jax.numpy as jnp
from jax import lax
from jax.experimental import pallas as pl
from jax.experimental.pallas import tpu as pltpu


def _round_up(x, m):
    return (x + m - 1) // m * m


def _cdiv(a, b):
    return -(-a // b)


def _vmem_budget_bytes():
    """VMEM budget per pallas_call, derived from the actual chip.

    v5e/v6e have 128 MiB physical VMEM, v7x only 64 MiB; keep ~30% headroom
    for Mosaic internal scratch and cap at 100 MiB.
    """
    try:
        cap = int(pltpu.get_tpu_info().vmem_capacity_bytes)
    except Exception:
        cap = 64 * 1024 * 1024  # conservative (v7x-sized) fallback
    return int(min(int(cap * 0.7), 100 * 1024 * 1024))


def _pad_cout_for_lanes(Cout, K):
    """Smallest Cout_p >= Cout with K^3*Cout_p a multiple of 128 (lane-dense,
    unmasked vst stores), as long as the padding overhead stays <= 2x."""
    taps = K ** 3
    step = 128 // math.gcd(taps, 128)
    cout_p = _round_up(Cout, step)
    if taps * cout_p <= 2 * max(taps * Cout, 128):
        return cout_p
    return Cout


def _pick_tile_m(M, N, Cin, Cn, budget_bytes):
    """Row-tile size for the fast path.

    Per pipelined grid step we hold double-buffered (Cin, tm) input and
    (tm, Cn) output tiles plus the (revisited, double-buffered) weight/bias.
    Bigger tiles amortize the ~0.35us/step overhead (>=512 rows ~ 85% of the
    HBM roofline); we also keep >=2 grid steps per call (v7x has two
    TensorCores) and prefer >=8 steps for pipelining.
    """
    bpe = 4  # size the budget in f32 terms (conservative for bf16 operands)
    fixed = 2 * (Cin * Cn + Cn) * bpe
    per_row = 2 * (Cin + Cn) * bpe
    cap = max((budget_bytes - fixed) // per_row, 128)
    cap = int(min(cap, 2048))
    if M <= cap:
        tm = M                       # full extent along the row dim: always legal
    else:
        tm = (cap // 128) * 128      # lane-dense (multiple-of-128) tiles
    # Expose more grid steps when that does not shrink tiles below 512 rows
    # (128 rows if that is what it takes to feed both v7x TensorCores).
    for target_steps, row_floor in ((8, 512), (2, 128)):
        if N * _cdiv(M, tm) >= target_steps:
            break
        tiles_per_image = max(_cdiv(target_steps, N), 1)
        cand = _round_up(_cdiv(M, tiles_per_image), 128)
        if cand >= row_floor and cand < M:
            tm = min(tm, cand)
    return max(int(tm), 1)


# ---------------------------------------------------------------------------
# Fast path: stride == K, padding == 0 (sub-pixel formulation).
# ---------------------------------------------------------------------------
def _subpixel_deconv_kernel(x_ref, w_ref, b_ref, o_ref):
    """x_ref: (1, Cin, tm)  input tile straight from the NCDHW tensor
                            (Cin on sublanes, rows on lanes; no wrapper
                            transpose, no padding pass),
    w_ref: (Cin, K^3*Cout_p), b_ref: (1, K^3*Cout_p) f32,
    o_ref: (1, tm, K^3*Cout_p)  lane-dense output tile.

    One MXU matmul (Cin contracted from the transposed orientation) + bias
    + ReLU in f32, cast on store."""
    acc = lax.dot_general(
        x_ref[0], w_ref[...],
        dimension_numbers=(((0,), (0,)), ((), ())),
        preferred_element_type=jnp.float32)
    acc = acc + b_ref[...]
    o_ref[0] = jnp.maximum(acc, 0.0).astype(o_ref.dtype)


def _deconv_subpixel(x, weight, bias, K, compute_dtype=None):
    N, Cin, D, H, W = x.shape
    Cout = weight.shape[1]
    M = D * H * W
    Cout_p = _pad_cout_for_lanes(Cout, K)
    Cn = (K ** 3) * Cout_p

    # (N, Cin, D, H, W) -> (N, Cin, D*H*W): free reshape, input read once.
    x3 = x.reshape(N, Cin, M)
    # (Cin, Cout, K, K, K) -> (Cin, K, K, K, Cout_p) -> (Cin, K^3*Cout_p);
    # column index = ((kd*K + kh)*K + kw)*Cout_p + co.
    w2 = jnp.transpose(weight, (0, 2, 3, 4, 1))
    if Cout_p != Cout:
        w2 = jnp.pad(w2, ((0, 0),) * 4 + ((0, Cout_p - Cout),))
    w2 = w2.reshape(Cin, Cn)
    b_p = bias if Cout_p == Cout else jnp.pad(bias, (0, Cout_p - Cout))
    b2 = jnp.tile(b_p, K ** 3).reshape(1, Cn).astype(jnp.float32)

    if compute_dtype is not None:  # e.g. jnp.bfloat16 for v5e/v6e/v7x MXU
        x3 = x3.astype(compute_dtype)
        w2 = w2.astype(compute_dtype)

    budget = _vmem_budget_bytes()
    tm = _pick_tile_m(M, N, Cin, Cn, budget)
    grid = (N, _cdiv(M, tm))          # ragged tail handled by Pallas masking

    in_itemsize = jnp.dtype(x3.dtype).itemsize
    out_itemsize = jnp.dtype(x.dtype).itemsize
    cost = pl.CostEstimate(
        flops=2 * N * M * Cin * Cn,
        transcendentals=0,
        bytes_accessed=(N * M * Cin * in_itemsize + Cin * Cn * in_itemsize
                        + 4 * Cn + N * M * Cn * out_itemsize),
    )

    out = pl.pallas_call(
        _subpixel_deconv_kernel,
        out_shape=jax.ShapeDtypeStruct((N, M, Cn), x.dtype),
        grid=grid,
        in_specs=[
            pl.BlockSpec((1, Cin, tm), lambda n, m: (n, 0, m)),
            pl.BlockSpec((Cin, Cn), lambda n, m: (0, 0)),
            pl.BlockSpec((1, Cn), lambda n, m: (0, 0)),
        ],
        out_specs=pl.BlockSpec((1, tm, Cn), lambda n, m: (n, m, 0)),
        compiler_params=pltpu.CompilerParams(
            dimension_semantics=("parallel", "parallel"),
            vmem_limit_bytes=budget,
        ),
        cost_estimate=cost,
    )(x3, w2, b2)

    # Depth-to-space: (N, M, K^3*Cout_p) -> (N, Cout, D*K, H*K, W*K).
    # TODO(synk): fold this pixel-shuffle into the kernel store (grid over
    # (n, d) with an NCDHW out_spec) to remove one output-sized HBM pass;
    # it requires an in-kernel (h,kh)/(w,kw) sublane/lane interleave that is
    # not expressible as a matmul epilogue, so it is left to XLA here.
    out = out.reshape(N, D, H, W, K, K, K, Cout_p)[..., :Cout]
    out = jnp.transpose(out, (0, 7, 1, 4, 2, 5, 3, 6))  # n,co,d,kd,h,kh,w,kw
    return out.reshape(N, Cout, D * K, H * K, W * K)


# ---------------------------------------------------------------------------
# General path: any stride / padding.
# ---------------------------------------------------------------------------
def _deconv_general_kernel(xp_ref, w_ref, b_ref, o_ref, acc_ref, *, K, Do, Ho, Wo):
    """xp_ref: (1, Dp, Hp, Wp, Cin) dilated+padded image
    w_ref : (K, K*K*Cin, Cout) flipped weights, (kh, kw, ci) fused
    b_ref : (1, Cout) f32
    o_ref : (1, Do*Ho*Wo, Cout)
    acc_ref: (Do*Ho*Wo, Cout) f32 VMEM scratch accumulator.

    Per kd: build the (kh, kw, ci)-fused patch and run ONE MXU matmul of
    contraction depth K*K*Cin, accumulating into VMEM scratch (bounded vreg
    live range)."""
    Cin = xp_ref.shape[-1]
    M2 = Do * Ho * Wo
    for kd in range(K):
        pieces = []
        for kh in range(K):
            for kw in range(K):
                p = xp_ref[0, pl.ds(kd, Do), pl.ds(kh, Ho), pl.ds(kw, Wo), :]
                pieces.append(p.reshape(M2, Cin))
        patch = pieces[0] if len(pieces) == 1 else jnp.concatenate(pieces, axis=-1)
        part = jnp.dot(patch, w_ref[kd], preferred_element_type=jnp.float32)
        if kd == 0:
            acc_ref[...] = part
        else:
            acc_ref[...] += part
    out = acc_ref[...] + b_ref[...]
    o_ref[0] = jnp.maximum(out, 0.0).astype(o_ref.dtype)


def _deconv_general(x, weight, bias, K, s, p, compute_dtype=None):
    N, Cin, D, H, W = x.shape
    Cout = weight.shape[1]
    q = K - 1 - p                      # conv-side padding (negative => crop)
    Do = (D - 1) * s - 2 * p + K
    Ho = (H - 1) * s - 2 * p + K
    Wo = (W - 1) * s - 2 * p + K
    M2 = Do * Ho * Wo

    # Zero-dilate + pad once in the wrapper (NDHWC).
    # TODO(synk): for s > 1 decompose into s^3 phase sub-convolutions on the
    # un-dilated input instead of materializing the zero-dilated tensor.
    x_ndhwc = jnp.transpose(x, (0, 2, 3, 4, 1))
    pad_cfg = [(0, 0, 0), (q, q, s - 1), (q, q, s - 1), (q, q, s - 1), (0, 0, 0)]
    xp = lax.pad(x_ndhwc, jnp.array(0.0, x.dtype), pad_cfg)
    Dp, Hp, Wp = xp.shape[1], xp.shape[2], xp.shape[3]

    # Flipped weights with (kh, kw, ci) fused so the contraction depth is
    # K*K*Cin per kd: wf[kd, (kh*K + kw)*Cin + ci, co]
    #                 = w[ci, co, K-1-kd, K-1-kh, K-1-kw].
    wf = jnp.transpose(weight[:, :, ::-1, ::-1, ::-1], (2, 3, 4, 0, 1))
    wf = wf.reshape(K, K * K * Cin, Cout)
    b2 = bias.reshape(1, Cout).astype(jnp.float32)

    if compute_dtype is not None:
        xp = xp.astype(compute_dtype)
        wf = wf.astype(compute_dtype)

    budget = _vmem_budget_bytes()
    itemsize = jnp.dtype(xp.dtype).itemsize
    cost = pl.CostEstimate(
        flops=2 * N * M2 * (K ** 3) * Cin * Cout,
        transcendentals=0,
        bytes_accessed=(N * Dp * Hp * Wp * Cin * itemsize
                        + (K ** 3) * Cin * Cout * itemsize
                        + 4 * Cout
                        + N * M2 * Cout * jnp.dtype(x.dtype).itemsize),
    )

    kernel = functools.partial(_deconv_general_kernel, K=K, Do=Do, Ho=Ho, Wo=Wo)
    # TODO(synk): this path still keeps one whole padded image + its output in
    # VMEM per grid step; halo'd spatial tiling via manual DMA
    # (memory_space=pl.ANY + make_async_copy) is needed for realistic volumes
    # and to give v7x's second TensorCore work when N == 1.
    out = pl.pallas_call(
        kernel,
        out_shape=jax.ShapeDtypeStruct((N, M2, Cout), x.dtype),
        grid=(N,),
        in_specs=[
            pl.BlockSpec((1, Dp, Hp, Wp, Cin), lambda n: (n, 0, 0, 0, 0)),
            pl.BlockSpec((K, K * K * Cin, Cout), lambda n: (0, 0, 0)),
            pl.BlockSpec((1, Cout), lambda n: (0, 0)),
        ],
        out_specs=pl.BlockSpec((1, M2, Cout), lambda n: (n, 0, 0)),
        scratch_shapes=[pltpu.VMEM((M2, Cout), jnp.float32)],
        compiler_params=pltpu.CompilerParams(
            dimension_semantics=("parallel",),
            vmem_limit_bytes=budget,
        ),
        cost_estimate=cost,
    )(xp, wf, b2)

    out = out.reshape(N, Do, Ho, Wo, Cout)
    # TODO(synk): general-path stores are Cout(<128)-wide masked stores and
    # this NDHWC->NCDHW transpose is an extra output pass; a fused lane-dense
    # (Wo*Cout) store layout would remove both.
    return jnp.transpose(out, (0, 4, 1, 2, 3))


def basic_conv_transpose3d(x, weight, bias, *, stride=1, padding=0,
                           compute_dtype=None):
    """Forward of BasicConvTranspose3d (ConvTranspose3d + ReLU).

    x:      (N, Cin, D, H, W)        (PyTorch NCDHW)
    weight: (Cin, Cout, K, K, K)     (PyTorch ConvTranspose3d layout)
    bias:   (Cout,)
    compute_dtype: optional MXU operand dtype (e.g. jnp.bfloat16); the
        accumulation, bias add and ReLU stay in f32 and the output keeps
        x.dtype.  Default None preserves full input precision.
    returns (N, Cout, Do, Ho, Wo)
    """
    # TODO(synk): ConvTranspose3d's output_padding parameter is not supported
    # (the module above does not use it).
    N, Cin, D, H, W = x.shape
    Cin_w, Cout, K, K2, K3 = weight.shape
    assert Cin_w == Cin and K == K2 == K3
    s, p = int(stride), int(padding)
    if s == K and p == 0:
        return _deconv_subpixel(x, weight, bias, K, compute_dtype=compute_dtype)
    return _deconv_general(x, weight, bias, K, s, p, compute_dtype=compute_dtype)


def _reference(x, weight, bias, *, stride, padding):
    """Pure-XLA reference matching PyTorch ConvTranspose3d + ReLU."""
    K = weight.shape[2]
    s, p = int(stride), int(padding)
    w_oi = jnp.transpose(weight, (1, 0, 2, 3, 4))[:, :, ::-1, ::-1, ::-1]
    y = lax.conv_general_dilated(
        x, w_oi,
        window_strides=(1, 1, 1),
        padding=[(K - 1 - p, K - 1 - p)] * 3,
        lhs_dilation=(s, s, s),
        dimension_numbers=("NCDHW", "OIDHW", "NCDHW"),
    )
    y = y + bias.reshape(1, -1, 1, 1, 1)
    return jnp.maximum(y, 0.0)


if __name__ == "__main__":
    key = jax.random.PRNGKey(0)
    k1, k2, k3, k4, k5, k6 = jax.random.split(key, 6)

    # Case 1 (fast sub-pixel path): classic 2x upsampling deconv.
    N, Cin, Cout = 2, 8, 16
    D = H = W = 4
    K, stride, padding = 2, 2, 0
    x = jax.random.normal(k1, (N, Cin, D, H, W), jnp.float32)
    weight = 0.1 * jax.random.normal(k2, (Cin, Cout, K, K, K), jnp.float32)
    bias = 0.1 * jax.random.normal(k3, (Cout,), jnp.float32)

    out = basic_conv_transpose3d(x, weight, bias, stride=stride, padding=padding)
    out = jax.block_until_ready(out)
    ref = _reference(x, weight, bias, stride=stride, padding=padding)
    assert out.shape == ref.shape == (N, Cout, 8, 8, 8), out.shape
    err = float(jnp.max(jnp.abs(out - ref)))
    assert err < 1e-3, f"fast path mismatch vs reference: {err}"

    # Case 2 (general path): stride=1, padding=1, K=3.
    N2, Cin2, Cout2 = 1, 8, 16
    D2 = H2 = W2 = 8
    Kg, sg, pg = 3, 1, 1
    x2 = jax.random.normal(k4, (N2, Cin2, D2, H2, W2), jnp.float32)
    w2 = 0.1 * jax.random.normal(k5, (Cin2, Cout2, Kg, Kg, Kg), jnp.float32)
    b2 = 0.1 * jax.random.normal(k6, (Cout2,), jnp.float32)

    out2 = basic_conv_transpose3d(x2, w2, b2, stride=sg, padding=pg)
    out2 = jax.block_until_ready(out2)
    ref2 = _reference(x2, w2, b2, stride=sg, padding=pg)
    assert out2.shape == ref2.shape == (N2, Cout2, 8, 8, 8), out2.shape
    err2 = float(jnp.max(jnp.abs(out2 - ref2)))
    assert err2 < 1e-3, f"general path mismatch vs reference: {err2}"

    print("KERNEL_OK")
</pallas_src>

<mosaic_0001>
module attributes {stable_mosaic.version = 11 : i64} {
  func.func @_subpixel_deconv_kernel(%arg0: i32, %arg1: i32, %arg2: memref<1x8x64xf32, #tpu.memory_space<vmem>>, %arg3: memref<8x128xf32, #tpu.memory_space<vmem>>, %arg4: memref<1x128xf32, #tpu.memory_space<vmem>>, %arg5: memref<1x64x128xf32, #tpu.memory_space<vmem>>) attributes {dimension_semantics = [#tpu.dimension_semantics<parallel>, #tpu.dimension_semantics<parallel>], iteration_bounds = array<i64: 2, 1>, scalar_prefetch = 0 : i64, scratch_operands = 0 : i64, tpu.core_type = #tpu.core_type<tc>, window_params = [{transform_indices = @transform_0, window_bounds = array<i64: 1, 8, 64>}, {pipeline_mode = #tpu.pipeline_mode<synchronous>, transform_indices = @transform_1, window_bounds = array<i64: 8, 128>}, {pipeline_mode = #tpu.pipeline_mode<synchronous>, transform_indices = @transform_2, window_bounds = array<i64: 1, 128>}, {transform_indices = @transform_3, window_bounds = array<i64: 1, 64, 128>}]} {
    %c0 = arith.constant 0 : index
    %c0_0 = arith.constant 0 : index
    %c0_1 = arith.constant 0 : index
    %0 = vector.load %arg2[%c0, %c0_0, %c0_1] : memref<1x8x64xf32, #tpu.memory_space<vmem>>, vector<1x8x64xf32>
    %1 = vector.shape_cast %0 : vector<1x8x64xf32> to vector<8x64xf32>
    %c0_2 = arith.constant 0 : index
    %c0_3 = arith.constant 0 : index
    %2 = vector.load %arg3[%c0_2, %c0_3] : memref<8x128xf32, #tpu.memory_space<vmem>>, vector<8x128xf32>
    %cst = arith.constant dense<0.000000e+00> : vector<64x128xf32>
    %3 = tpu.matmul %1, %2, %cst {dimension_numbers = #tpu.dot_dimension_numbers<[0], [0], [1], [1], [0, 1, 1, 1], [], []>} : vector<8x64xf32>, vector<8x128xf32>, vector<64x128xf32> -> vector<64x128xf32>
    %c0_4 = arith.constant 0 : index
    %c0_5 = arith.constant 0 : index
    %4 = vector.load %arg4[%c0_4, %c0_5] : memref<1x128xf32, #tpu.memory_space<vmem>>, vector<1x128xf32>
    %5 = vector.broadcast %4 : vector<1x128xf32> to vector<64x128xf32>
    %6 = arith.addf %3, %5 : vector<64x128xf32>
    %cst_6 = arith.constant 0.000000e+00 : f32
    %7 = vector.broadcast %cst_6 : f32 to vector<64x128xf32>
    %8 = arith.maximumf %6, %7 : vector<64x128xf32>
    %c0_7 = arith.constant 0 : index
    %c0_8 = arith.constant 0 : index
    %c0_9 = arith.constant 0 : index
    %9 = vector.load %arg5[%c0_7, %c0_8, %c0_9] : memref<1x64x128xf32, #tpu.memory_space<vmem>>, vector<1x64x128xf32>
    %10 = vector.shape_cast %9 : vector<1x64x128xf32> to vector<64x128xf32>
    %11 = vector.shape_cast %8 : vector<64x128xf32> to vector<1x64x128xf32>
    tpu.vector_store %arg5[%c0_7, %c0_8, %c0_9], %11 {strides = array<i32>} : memref<1x64x128xf32, #tpu.memory_space<vmem>>, vector<1x64x128xf32>,
    return
  }
  func.func @transform_0(%arg0: i32, %arg1: i32) -> (i32, i32, i32) {
    %c0_i32 = arith.constant 0 : i32
    %c0_i32_0 = arith.constant 0 : i32
    return %arg0, %c0_i32, %arg1 : i32, i32, i32
  }
  func.func @transform_1(%arg0: i32, %arg1: i32) -> (i32, i32) {
    %c0_i32 = arith.constant 0 : i32
    %c0_i32_0 = arith.constant 0 : i32
    %c0_i32_1 = arith.constant 0 : i32
    return %c0_i32, %c0_i32_0 : i32, i32
  }
  func.func @transform_2(%arg0: i32, %arg1: i32) -> (i32, i32) {
    %c0_i32 = arith.constant 0 : i32
    %c0_i32_0 = arith.constant 0 : i32
    %c0_i32_1 = arith.constant 0 : i32
    return %c0_i32, %c0_i32_0 : i32, i32
  }
  func.func @transform_3(%arg0: i32, %arg1: i32) -> (i32, i32, i32) {
    %c0_i32 = arith.constant 0 : i32
    %c0_i32_0 = arith.constant 0 : i32
    return %arg0, %arg1, %c0_i32 : i32, i32, i32
  }
}

</mosaic_0001>

<bundles_post_ra>
// kernel: tpu_custom_call.1
= control target key start
LH: loop header
LB: loop body
LE: loop exit
PB: predicated region body
PF: predicated region fallthrough
CT: control target
= control target key end

     0   :  { %8 = vsyncpa [#allocation3], 0  ;;  %s902_s0 = inlined_call_operand.hbm [shape: f32[2,8,64], index: 0, kind: input, shape index: {}]   ;;  %s903_s1 = inlined_call_operand.hbm [shape: f32[8,128], index: 1, kind: input, shape index: {}]   ;;  %s904_s2 = inlined_call_operand.vmem [shape: f32[1,128], index: 2, kind: input, shape index: {}]   ;;  %s905_s3 = inlined_call_operand.hbm [shape: f32[2,64,128], index: 3, kind: output, shape index: {}]  }
   0x1   :  { %10 = vsyncpa [#allocation3 + $0x1], 0 }
   0x2   :  { %11 = vsyncpa [#allocation6], 0 }
   0x3   :  { %12 = vsyncpa [#allocation4], 0 }
   0x4   :  { %14 = vsyncpa [#allocation4 + $0x1], 0  ;;  %s730_s12 = smov 0   ;;  %s732_s13 = smov 0  }
   0x5   :  { %s734_s14 = smov 0   ;;  %s736_s15 = smov 0  }
   0x6   :  { %s738_s16 = smov 0   ;;  %s740_s17 = smov 0  }
   0x7 LB: > { %s454_s18 = sadd.s32 4294967295, %s705_s17   ;;  %s455_s19 = sadd.s32 4294967294, %s705_s17   ;;  %s705_s17 = sphi %s740_s17, %s20_s17   ;;  %s701_s16 = sphi %s738_s16, %s917_s16   ;;  %s697_s15 = sphi %s736_s15, %s916_s15   ;;  %s693_s14 = sphi %s734_s14, %s915_s14   ;;  %s689_s13 = sphi %s732_s13, %s914_s13   ;;  %s685_s12 = sphi %s730_s12, %s913_s12  }
   0x8   : > { %p54_p0 = scmp.ne.s32.totalorder %s689_s13, %s685_s12  ;;  %p764_p1 = scmp.eq.s32.totalorder %s454_s18, 0 }
   0x9   : > { %p768_p2 = scmp.eq.s32.totalorder %s454_s18, 1  ;;  %p128_p3 = scmp.eq.s32.totalorder %s455_s19, 1 }
   0xa   : > { %p774_p4 = por %p764_p1, %p54_p0  ;;  %p456_p5 = scmp.ge.s32.totalorder %s705_s17, 1 }
   0xb   : > { %p779_p6 = por %p128_p3, %p54_p0  ;;  %p135_p7 = scmp.lt.s32.totalorder %s705_s17, 3 }
   0xc   : > { %s147_s26 = sshll.u32 %s903_s1, 4  ;;  %p458_p9 = scmp.ge.s32.totalorder %s705_s17, 2  ;;  %s148_s26 = int_to_ptr.hbm [resolvable:$true] %s147_s26 }
   0xd   : > { %p787_p8 = pnand %p456_p5, %p135_p7  ;;  %s707_s28 = smov [#allocation5]  }
   0xe   : > { %s149_s29 = sshll.u32 %s707_s28, 4  ;;  %s32_s30 = sadd.s32 1, %s701_s16  ;;  %s150_s29 = int_to_ptr.vmem [resolvable:$true] %s149_s29 }
   0xf   : > { %p490_p10 = pneg %p787_p8  ;;  %p34_p12 = scmp.ge.s32.totalorder %s32_s30, 2 }
  0x10   : > { %s41_s4 = sadd.s32 1, %s693_s14  ;;  %p48_p13 = scmp.ne.s32.totalorder %s693_s14, %s689_s13 }
  0x11   : > { %p491_p11 = pnand %p490_p10, %p764_p1  ;;  %p49_p0 = scmp.eq.s32.totalorder %s705_s17, 0 }
  0x12   : > { %s919_s30 = smov (%p34_p12, %s32_s30), 0  ;;  %p809_p5 = por %p768_p2, %p48_p13 }
  0x13   : > { %493 = dma.hbm_to_vmem [thread:$0]  (!%p491_p11), %s148_s26, 128, %s150_s29, [#allocation6]  }
  0x14   : > { %p803_p3 = por %p49_p0, %p48_p13  ;;  %s36_s7 = ssub.s32 %s701_s16, %s919_s30 }
  0x15   : > { %p503_p7 = scmp.lt.s32.totalorder %s705_s17, 2  ;;  %p39_p10 = scmp.eq.s32.totalorder %s36_s7, 0 }
  0x16   : > { %s163_s8 = sand.u32 1, %s693_s14   ;;  %s460_s11 = sshll.u32 %s701_s16, 3 }
  0x17   : > { %s459_s9 = sshll.u32 %s163_s8, 3  ;;  %s172_s24 = scalar_lea.hbm %s902_s0, %s460_s11 }
  0x18   : > { %s818_s10 = scalar_select %p39_p10, %s693_s14, %s41_s4  }
  0x19   : > { %s167_s25 = scalar_lea.vmem [#allocation2], %s459_s9  ;;  %s174_s21 = sshll.u32 %s172_s24, 4  ;;  %s175_s21 = int_to_ptr.hbm [resolvable:$true] %s174_s21 }
  0x1a   : > { %s176_s26 = sshll.u32 %s167_s25, 4  ;;  %p495_p2 = pnand %p503_p7, %p803_p3  ;;  %s177_s26 = int_to_ptr.vmem [resolvable:$true] %s176_s26 }
  0x1b   : > { %s164_s28 = scalar_lea.sflag [#allocation3], %s163_s8  ;;  %185 = sbr.rel (%p787_p8) target bundleno = 397 (0x18d), region = 32 }
  0x1c   : > { %497 = dma.hbm_to_vmem [thread:$0]  (!%p495_p2), %s175_s21, 128, %s177_s26, %s164_s28  }
  0x1d   : > { %s829_s29 = sand.u32 (!%p787_p8), 1, %s689_s13  }
  0x1e   : > { %s462_s4 = sshll.u32 (!%p787_p8), %s829_s29, 3  ;;  %s188_s7 = scalar_lea.sflag (!%p787_p8), [#allocation3], %s829_s29 }
  0x1f   : > { %s191_s9 = scalar_lea.vmem (!%p787_p8), [#allocation2], %s462_s4 }
  0x20   : > { %672 = dma.done.wait (%p774_p4), %s188_s7, 128  }
  0x21   : > { %674 = vsyncadd (%p774_p4), %s188_s7, 4294967168 }
  0x22   : > { %676 = dma.done.wait (%p764_p1), [#allocation6], 128  }
  0x23   : > { %678 = vsyncadd (%p764_p1), [#allocation6], 4294967168  ;;  %v221_v0 = vld [vmem:[%s191_s9] sm:$0xff]  ;;  %v222_v1 = vld [vmem:[#allocation5] sm:$0xff]  ;;  %vm259_vm0 = vcmask 64512   ;;  %s464_s27 = sshll.u32 %s829_s29, 6 }
  0x24   : > { %227 = vxpose.xlu0.b32.start.end [1/1] (short) (narrow) %v221_v0, 64  ;;  %299 = vmatpush.msra.mxu0 %v222_v1  ;;  %v558_v10 = vld [vmem:[%s904_s2] ss:$0 sm:$0xff]  ;;  %s853_s5 = scalar_lea.vmem [#allocation7], %s464_s27  ;;  %s478_s8 = sshll.u32 %s697_s15, 6 }
  0x25   : > { %479 = vmatpush.msra.mxu1 %v222_v1  ;;  %480 = vmatpush.msra.mxu2 %v222_v1  ;;  %s355_s19 = scalar_lea.hbm %s905_s3, %s478_s8  ;;  %s356_s24 = sshll.u32 %s853_s5, 4  ;;  %s357_s24 = int_to_ptr.vmem [resolvable:$true] %s356_s24 }
  0x26   : > { %481 = vmatpush.msra.mxu3 %v222_v1  ;;  %s358_s25 = sshll.u32 %s355_s19, 4  ;;  %s342_s26 = scalar_lea.sflag [#allocation4], %s829_s29  ;;  %s359_s25 = int_to_ptr.hbm [resolvable:$true] %s358_s25 }
  0x27   : > { %s633_s21 = sshra.s32 %s359_s25, 4  ;;  %s639_s7 = scalar_lea.hbm %s905_s3, 128  ;;  %s634_s21 = int_to_ptr.hbm [resolvable:$true] %s633_s21 }
  0x28   : > { %s635_s28 = scalar_lea.hbm %s634_s21, 64  ;;  %p640_p11 = scmp.lt.s32.totalorder %s634_s21, %s905_s3 }
  0x29   : > { %p636_p1 = scmp.ne.s32.totalorder %s634_s21, %s635_s28  ;;  %p641_p12 = scmp.lt.s32.totalorder %s639_s7, %s635_s28 }
  0x2b   : > { %p637_p4 = pnand %p636_p1, %p809_p5  ;;  %p642_p13 = por %p641_p12, %p640_p11 }
  0x2d   : > { %p638_p8 = pneg %p637_p4 }
  0x2f   : > { %p643_p0 = pnand %p642_p13, %p638_p8 }
  0xc8   : > { %v243_v2 = vpop.trf.xlu0 }
  0xc9   : > { %465 = vmatmul.msk.f32.vlgmr.msra.gmra.mxu0 %vm259_vm0, %v243_v2 }
  0xd0   : > { %v244_v3 = vpop.trf.xlu0 }
  0xd1   : > { %466 = vmatmul.msk.f32.gmra.mxu0 %vm259_vm0, %v244_v3 }
  0xd8   : > { %v245_v4 = vpop.trf.xlu0 }
  0xd9   : > { %467 = vmatmul.msk.f32.vlgmr.msra.gmra.mxu1 %vm259_vm0, %v245_v4 }
  0xe0   : > { %v246_v5 = vpop.trf.xlu0 }
  0xe1   : > { %468 = vmatmul.msk.f32.gmra.mxu1 %vm259_vm0, %v246_v5 }
  0xe8   : > { %v247_v6 = vpop.trf.xlu0 }
  0xe9   : > { %469 = vmatmul.msk.f32.vlgmr.msra.gmra.mxu2 %vm259_vm0, %v247_v6 }
  0xf0   : > { %v248_v7 = vpop.trf.xlu0 }
  0xf1   : > { %470 = vmatmul.msk.f32.gmra.mxu2 %vm259_vm0, %v248_v7 }
  0xf8   : > { %v249_v8 = vpop.trf.xlu0 }
  0xf9   : > { %471 = vmatmul.msk.f32.vlgmr.msra.gmra.mxu3 %vm259_vm0, %v249_v8 }
 0x100   : > { %v250_v9 = vpop.trf.xlu0 }
 0x101   : > { %472 = vmatmul.msk.f32.gmra.mxu3 %vm259_vm0, %v250_v9 }
 0x146   : > { %v301_v11 = vpop.f32.mrf.mxu0 }
 0x147   : > { %v302_v12 = vadd.f32 %v558_v10, %v301_v11 }
 0x149   : > { %v325_v13 = vmax.f32 %v302_v12, 0.0 }
 0x14b   : > { %333 = vst [vmem:[%s853_s5] sm:$0xff] %v325_v13 }
 0x14e   : > { %v304_v14 = vpop.f32.mrf.mxu0 }
 0x14f   : > { %v305_v15 = vadd.f32 %v558_v10, %v304_v14 }
 0x151   : > { %v326_v16 = vmax.f32 %v305_v15, 0.0 }
 0x153   : > { %334 = vst [vmem:[%s853_s5 + $0x8] sm:$0xff] %v326_v16 }
 0x156   : > { %v307_v17 = vpop.f32.mrf.mxu1 }
 0x157   : > { %v308_v18 = vadd.f32 %v558_v10, %v307_v17 }
 0x159   : > { %v327_v19 = vmax.f32 %v308_v18, 0.0 }
 0x15b   : > { %335 = vst [vmem:[%s853_s5 + $0x10] sm:$0xff] %v327_v19 }
 0x15e   : > { %v310_v20 = vpop.f32.mrf.mxu1 }
 0x15f   : > { %v311_v21 = vadd.f32 %v558_v10, %v310_v20 }
 0x161   : > { %v328_v22 = vmax.f32 %v311_v21, 0.0 }
 0x163   : > { %336 = vst [vmem:[%s853_s5 + $0x18] sm:$0xff] %v328_v22 }
 0x16c   : > { %v313_v23 = vpop.f32.mrf.mxu2 }
 0x16d   : > { %v314_v24 = vadd.f32 %v558_v10, %v313_v23 }
 0x16f   : > { %v329_v25 = vmax.f32 %v314_v24, 0.0 }
 0x171   : > { %337 = vst [vmem:[%s853_s5 + $0x20] sm:$0xff] %v329_v25 }
 0x174   : > { %v316_v26 = vpop.f32.mrf.mxu2 }
 0x175   : > { %v317_v27 = vadd.f32 %v558_v10, %v316_v26 }
 0x177   : > { %v330_v28 = vmax.f32 %v317_v27, 0.0 }
 0x179   : > { %338 = vst [vmem:[%s853_s5 + $0x28] sm:$0xff] %v330_v28 }
 0x17c   : > { %v319_v29 = vpop.f32.mrf.mxu3 }
 0x17d   : > { %v320_v30 = vadd.f32 %v558_v10, %v319_v29 }
 0x17f   : > { %v331_v31 = vmax.f32 %v320_v30, 0.0 }
 0x181   : > { %339 = vst [vmem:[%s853_s5 + $0x30] sm:$0xff] %v331_v31 }
 0x184   : > { %v322_v32 = vpop.f32.mrf.mxu3 }
 0x185   : > { %v323_v33 = vadd.f32 %v558_v10, %v322_v32 }
 0x187   : > { %v332_v34 = vmax.f32 %v323_v33, 0.0 }
 0x189   : > { %340 = vst [vmem:[%s853_s5 + $0x38] sm:$0xff] %v332_v34 }
 0x18a   : > { %646 = shalt.err (!%p643_p0)
}
 0x18b   : > { %s708_s29 = smov 128   ;;  %s709_s22 = smov 8  }
 0x18c   : > { %488 = dma.vmem_to_hbm [thread:$0]  (%p809_p5), %s357_s24, 1024, %s359_s25, %s342_s26, %s708_s29, %s708_s29, %s709_s22  }
 0x18d PF: > { %s373_s27 = sand.u32 1, %s685_s12   ;;  %p499_p3 = pnand %p458_p9, %p779_p6 }
 0x18e   : > { %s374_s5 = scalar_lea.sflag [#allocation4], %s373_s27 }
 0x18f   : > { %p500_p7 = pneg %p499_p3 }
 0x191   : > { %680 = dma.done.wait (%p500_p7), %s374_s5, 1024  }
 0x192   : > { %682 = vsyncadd (%p500_p7), %s374_s5, 4294966272  ;;  %s20_s17 = sadd.s32 1, %s705_s17   ;;  %s913_s12 = smov %s689_s13 }
 0x193   : > { %p17_p10 = scmp.ge.s32.totalorder %s20_s17, 4   ;;  %s914_s13 = smov %s693_s14 }
 0x194   : > { %s915_s14 = smov %s818_s10  ;;  %s916_s15 = smov %s701_s16 }
 0x195   : > { %s917_s16 = smov %s919_s30  ;;  %19 = sbr.rel (!%p17_p10) target bundleno = 7 (0x7), region = 81 }
 0x19a   :  { %380 = vsyncpa [#allocation3], 1 }
 0x19b   :  { %382 = vsyncpa [#allocation3 + $0x1], 1 }
 0x19c   :  { %383 = vsyncpa [#allocation6], 1 }
 0x19d   :  { %384 = vsyncpa [#allocation4], 1 }
 0x19e   :  { %386 = vsyncpa [#allocation4 + $0x1], 1 }

</bundles_post_ra>
